<compile_context>
chip_gen: v7x
topology: tpu7x:2x2x1
jax: 0.10.0
libtpu: 0.0.40
codegen_flags: <defaults>
</compile_context>

<pallas_src>
import math

import jax
import jax.numpy as jnp
from jax.experimental import pallas as pl
from jax.experimental.pallas import tpu as pltpu


_LANE = 128                               # vreg lane width (last dim)
_SUBLANE = 8                              # layout granularity, second-to-last dim
_TARGET_TILE_BYTES = 2 * 1024 * 1024      # ~2 MiB per x tile (roofline-flat beyond this)
_VMEM_LIMIT_BYTES = 32 * 1024 * 1024      # explicit, safe on v5e/v6e/v7x


def _round_down(v, m):
    return (v // m) * m


def _round_up(v, m):
    return ((v + m - 1) // m) * m


def _pe_add_kernel(x_ref, pe_ref, o_ref):
    # Elementwise add; pe broadcasts over the leading batch-tile dim
    # (numpy trailing-dim alignment: (tB,tS,H)+(tS,H) and (tB,tC)+(1,tC)).
    o_ref[...] = x_ref[...] + pe_ref[...]


def make_pe_table(hid_dim: int, max_len: int = 2000, dtype=jnp.float32):
    """Builds the (max_len, hid_dim) sinusoidal table exactly as the PyTorch init."""
    assert hid_dim % 2 == 0, "hid_dim must be even (same limitation as the PyTorch module)"
    position = jnp.arange(0.0, max_len, dtype=jnp.float32)[:, None]            # (max_len, 1)
    div_term = jnp.exp(
        jnp.arange(0.0, hid_dim, 2, dtype=jnp.float32)
        * -(math.log(10000.0) / hid_dim)
    )                                                                           # (hid_dim/2,)
    angles = position * div_term                                                # (max_len, hid_dim/2)
    pe = jnp.zeros((max_len, hid_dim), dtype=jnp.float32)
    pe = pe.at[:, 0::2].set(jnp.sin(angles))
    pe = pe.at[:, 1::2].set(jnp.cos(angles))
    return pe.astype(dtype)


def _forward_wide(x, pe_table):
    """H multiple of 128: batched tiles (tB, tS, H); window straight into the pe table."""
    B, S, H = x.shape
    itemsize = x.dtype.itemsize
    row_bytes = H * itemsize

    # Sequence tile: multiple of 8 (legal with edge masking against both x and the
    # full pe table), sized toward the ~2 MiB target, never wastefully above ceil8(S).
    want_s = max(_SUBLANE, _round_down(_TARGET_TILE_BYTES // row_bytes, _SUBLANE))
    tS = min(want_s, _round_up(S, _SUBLANE))
    n_s = pl.cdiv(S, tS)

    # Batch tile: fill the remaining block budget (leading dim, no layout constraint).
    tB = max(1, min(B, _TARGET_TILE_BYTES // (tS * row_bytes)))
    n_b = pl.cdiv(B, tB)

    cost = pl.CostEstimate(
        flops=B * S * H,
        transcendentals=0,
        bytes_accessed=(2 * B * S * H + S * H) * itemsize,
    )

    # Grid ordering: keep the pe tile resident across the inner axis, and make sure
    # the LEADING parallel axis has >=2 blocks when possible (v7x dual TensorCore).
    if n_s >= 2 or n_b == 1:
        grid = (n_s, n_b)                       # batch inner -> pe tile resident across it
        x_map = lambda s, b: (b, s, 0)
        pe_map = lambda s, b: (s, 0)
    else:
        grid = (n_b, n_s)                       # n_s == 1: pe constant, put batch leading
        x_map = lambda b, s: (b, s, 0)
        pe_map = lambda b, s: (s, 0)

    return pl.pallas_call(
        _pe_add_kernel,
        out_shape=jax.ShapeDtypeStruct((B, S, H), x.dtype),
        grid_spec=pltpu.PrefetchScalarGridSpec(
            num_scalar_prefetch=0,
            grid=grid,
            in_specs=[
                pl.BlockSpec((tB, tS, H), x_map),   # x
                pl.BlockSpec((tS, H), pe_map),      # pe table window (broadcast over tB)
            ],
            out_specs=pl.BlockSpec((tB, tS, H), x_map),
        ),
        compiler_params=pltpu.CompilerParams(
            dimension_semantics=("parallel", "parallel"),
            vmem_limit_bytes=_VMEM_LIMIT_BYTES,
        ),
        cost_estimate=cost,
    )(x, pe_table)


def _forward_flat(x, pe_table, pe_flat):
    """Narrow / unaligned H: flatten each batch row to (S*H,) for lane-dense stores."""
    B, S, H = x.shape
    L = S * H
    itemsize = x.dtype.itemsize
    x2d = x.reshape(B, L)

    lane_aligned = (L % _LANE == 0)
    if pe_flat is not None and lane_aligned and pe_flat.dtype == x.dtype:
        # Precomputed flattened table (1, max_len*H): its prefix is exactly
        # pe[:S].ravel(), so column-block indexing needs no per-call copy.
        pe2d = pe_flat
    else:
        # Corner case (L not lane-aligned or no flat buffer): tiny one-pass copy of
        # only the S*H elements actually needed.
        pe2d = pe_table[:S, :].astype(x.dtype).reshape(1, L)

    # Column tile: multiple of 128 (or the full row), sized so even a min-height
    # row tile stays within the ~2 MiB budget.
    base_rows = min(B, _SUBLANE)
    if L <= _LANE:
        tC = L
    else:
        max_c = L if lane_aligned else _round_down(L, _LANE)
        cap_c = max(_LANE, _round_down(_TARGET_TILE_BYTES // (base_rows * itemsize), _LANE))
        tC = min(max_c, cap_c)
    n_c = pl.cdiv(L, tC)

    # Row tile: grow (multiples of 8, or the full batch) to fill the block budget
    # instead of hard-capping at 8 -> far fewer grid steps when L is small.
    rows_budget = max(1, _TARGET_TILE_BYTES // (tC * itemsize))
    if B <= rows_budget or B <= _SUBLANE:
        tB = B
    else:
        tB = max(_SUBLANE, _round_down(rows_budget, _SUBLANE))
    n_r = pl.cdiv(B, tB)

    cost = pl.CostEstimate(
        flops=B * L,
        transcendentals=0,
        bytes_accessed=(2 * B * L + L) * itemsize,
    )

    if n_c >= 2 or n_r == 1:
        grid = (n_c, n_r)                       # rows inner -> pe column tile resident
        x_map = lambda c, r: (r, c)
        pe_map = lambda c, r: (0, c)
    else:
        grid = (n_r, n_c)                       # n_c == 1: put the row axis leading (v7x)
        x_map = lambda r, c: (r, c)
        pe_map = lambda r, c: (0, c)

    out2d = pl.pallas_call(
        _pe_add_kernel,
        out_shape=jax.ShapeDtypeStruct((B, L), x.dtype),
        grid_spec=pltpu.PrefetchScalarGridSpec(
            num_scalar_prefetch=0,
            grid=grid,
            in_specs=[
                pl.BlockSpec((tB, tC), x_map),     # x rows
                pl.BlockSpec((1, tC), pe_map),     # pe row (broadcast over rows)
            ],
            out_specs=pl.BlockSpec((tB, tC), x_map),
        ),
        compiler_params=pltpu.CompilerParams(
            dimension_semantics=("parallel", "parallel"),
            vmem_limit_bytes=_VMEM_LIMIT_BYTES,
        ),
        cost_estimate=cost,
    )(x2d, pe2d)
    return out2d.reshape(B, S, H)


def positional_encoding_forward(x, pe_table, pe_flat=None, PE: bool = True):
    """x: (B, S, H). Adds pe_table[:S] to every batch element (if PE).

    Dropout in the reference module is a no-op in eval/inference mode,
    which is what this function reproduces.
    """
    # TODO(synk): training-mode dropout (stochastic masking via pltpu.prng_*) not emitted.
    if not PE:
        return x
    B, S, H = x.shape
    assert S <= pe_table.shape[0], "sequence length exceeds max_len of the PE table"
    assert H == pe_table.shape[1], "hidden dim mismatch with the PE table"
    if pe_table.dtype != x.dtype:
        # Fallback: cast only the rows actually needed (prefer building the table —
        # and its flattened view — in the model dtype at setup time, see class below).
        pe_table = pe_table[:S, :].astype(x.dtype)
        pe_flat = None

    if H % _LANE == 0:
        return _forward_wide(x, pe_table)
    return _forward_flat(x, pe_table, pe_flat)


class PositionalEncoding:
    """Setup-time analogue of the PyTorch module: buffers built once, in model dtype."""

    def __init__(self, hid_dim, dropout=0.0, PE=True, max_len=2000, dtype=jnp.float32):
        self.PE = PE
        self.dropout = dropout  # identity in eval/inference mode (see TODO above)
        self.pe = make_pe_table(hid_dim, max_len=max_len, dtype=dtype)   # (max_len, H)
        self.pe_flat = self.pe.reshape(1, max_len * hid_dim)             # (1, max_len*H)

    def __call__(self, x):
        return positional_encoding_forward(x, self.pe, self.pe_flat, self.PE)


if __name__ == "__main__":
    key = jax.random.PRNGKey(0)
    k1, k2, k3, k4 = jax.random.split(key, 4)

    # Case 1: narrow hidden dim (H=32 < 128) -> lane-dense flattened path,
    # L = 256 is lane-aligned so the precomputed flat table is windowed directly.
    B, S, H = 2, 8, 32
    mod1 = PositionalEncoding(hid_dim=H, dropout=0.1, PE=True, max_len=2000)
    x1 = jax.random.normal(k1, (B, S, H), dtype=jnp.float32)
    out1 = jax.block_until_ready(mod1(x1))
    ref1 = x1 + mod1.pe[None, :S, :]
    assert out1.shape == (B, S, H)
    assert jnp.allclose(out1, ref1, atol=1e-6), "mismatch vs reference (flat path)"

    # Case 2: lane-aligned hidden dim (H=128) -> wide batched-tile path.
    B2, S2, H2 = 2, 16, 128
    mod2 = PositionalEncoding(hid_dim=H2, dropout=0.1, PE=True, max_len=2000)
    x2 = jax.random.normal(k2, (B2, S2, H2), dtype=jnp.float32)
    out2 = jax.block_until_ready(mod2(x2))
    ref2 = x2 + mod2.pe[None, :S2, :]
    assert out2.shape == (B2, S2, H2)
    assert jnp.allclose(out2, ref2, atol=1e-6), "mismatch vs reference (wide path)"

    # Case 3: wide path with ragged S (edge-masked sequence tile) + batch tiling.
    B3, S3, H3 = 4, 20, 256
    mod3 = PositionalEncoding(hid_dim=H3, dropout=0.0, PE=True, max_len=2000)
    x3 = jax.random.normal(k3, (B3, S3, H3), dtype=jnp.float32)
    out3 = jax.block_until_ready(mod3(x3))
    ref3 = x3 + mod3.pe[None, :S3, :]
    assert jnp.allclose(out3, ref3, atol=1e-6), "mismatch vs reference (ragged wide path)"

    # Case 4: tiny non-lane-aligned flattened row (L = 5*10 = 50) -> full-dim blocks.
    B4, S4, H4 = 3, 5, 10
    mod4 = PositionalEncoding(hid_dim=H4, dropout=0.0, PE=True, max_len=2000)
    x4 = jax.random.normal(k4, (B4, S4, H4), dtype=jnp.float32)
    out4 = jax.block_until_ready(mod4(x4))
    ref4 = x4 + mod4.pe[None, :S4, :]
    assert jnp.allclose(out4, ref4, atol=1e-6), "mismatch vs reference (tiny flat path)"

    # PE=False passthrough.
    mod5 = PositionalEncoding(hid_dim=H, dropout=0.1, PE=False, max_len=2000)
    out5 = mod5(x1)
    assert jnp.allclose(out5, x1)

    print("KERNEL_OK")
</pallas_src>

<mosaic_0001>
module attributes {stable_mosaic.version = 11 : i64} {
  func.func @_pe_add_kernel(%arg0: i32, %arg1: i32, %arg2: memref<2x256xf32, #tpu.memory_space<vmem>>, %arg3: memref<1x256xf32, #tpu.memory_space<vmem>>, %arg4: memref<2x256xf32, #tpu.memory_space<vmem>>) attributes {dimension_semantics = [#tpu.dimension_semantics<parallel>, #tpu.dimension_semantics<parallel>], iteration_bounds = array<i64: 1, 1>, scalar_prefetch = 0 : i64, scratch_operands = 0 : i64, tpu.core_type = #tpu.core_type<tc>, window_params = [{transform_indices = @transform_0, window_bounds = array<i64: 2, 256>}, {transform_indices = @transform_1, window_bounds = array<i64: 1, 256>}, {transform_indices = @transform_2, window_bounds = array<i64: 2, 256>}]} {
    %c0 = arith.constant 0 : index
    %c0_0 = arith.constant 0 : index
    %0 = vector.load %arg2[%c0, %c0_0] : memref<2x256xf32, #tpu.memory_space<vmem>>, vector<2x256xf32>
    %c0_1 = arith.constant 0 : index
    %c0_2 = arith.constant 0 : index
    %1 = vector.load %arg3[%c0_1, %c0_2] : memref<1x256xf32, #tpu.memory_space<vmem>>, vector<1x256xf32>
    %2 = vector.broadcast %1 : vector<1x256xf32> to vector<2x256xf32>
    %3 = arith.addf %0, %2 : vector<2x256xf32>
    %c0_3 = arith.constant 0 : index
    %c0_4 = arith.constant 0 : index
    %4 = vector.load %arg4[%c0_3, %c0_4] : memref<2x256xf32, #tpu.memory_space<vmem>>, vector<2x256xf32>
    tpu.vector_store %arg4[%c0_3, %c0_4], %3 {strides = array<i32>} : memref<2x256xf32, #tpu.memory_space<vmem>>, vector<2x256xf32>,
    return
  }
  func.func @transform_0(%arg0: i32, %arg1: i32) -> (i32, i32) {
    %c0_i32 = arith.constant 0 : i32
    return %arg1, %arg0 : i32, i32
  }
  func.func @transform_1(%arg0: i32, %arg1: i32) -> (i32, i32) {
    %c0_i32 = arith.constant 0 : i32
    %c0_i32_0 = arith.constant 0 : i32
    return %c0_i32, %arg0 : i32, i32
  }
  func.func @transform_2(%arg0: i32, %arg1: i32) -> (i32, i32) {
    %c0_i32 = arith.constant 0 : i32
    return %arg1, %arg0 : i32, i32
  }
}

</mosaic_0001>

<bundles_post_ra>
// kernel: tpu_custom_call.1
= control target key start
LH: loop header
LB: loop body
LE: loop exit
PB: predicated region body
PF: predicated region fallthrough
CT: control target
= control target key end

     0   :  { %7 = vsyncpa [#allocation3], 0  ;;  %s215_s0 = inlined_call_operand.hbm [shape: f32[2,256], index: 0, kind: input, shape index: {}]   ;;  %s216_s1 = inlined_call_operand.hbm [shape: f32[1,64000], index: 1, kind: input, shape index: {}]   ;;  %s217_s2 = inlined_call_operand.hbm [shape: f32[2,256], index: 2, kind: output, shape index: {}]  }
   0x1   :  { %8 = vsyncpa [#allocation6], 0 }
   0x2   :  { %9 = vsyncpa [#allocation4], 0  ;;  %s150_s9 = smov [#allocation2]   ;;  %s151_s11 = smov [#allocation5]  }
   0x3   :  { %s16_s10 = sshll.u32 %s150_s9, 4  ;;  %s26_s12 = sshll.u32 %s151_s11, 4  ;;  %s17_s10 = int_to_ptr.vmem [resolvable:$true] %s16_s10  ;;  %s169_s12 = int_to_ptr.vmem [resolvable:$true] %s26_s12 }
   0x4   :  { %s78_s15 = scalar_lea.hbm %s215_s0, 64 }
   0x5   :  { %p79_p0 = scmp.ne.s32.totalorder %s215_s0, %s78_s15  ;;  %p82_p1 = scmp.lt.u32.totalorder %s78_s15, %s215_s0 }
   0x7   :  { %p84_p2 = pnand %p82_p1, %p79_p0 }
   0x9   :  { %87 = shalt.err (!%p84_p2)
}
   0xa   :  { %s88_s20 = scalar_lea.vmem %s17_s10, 64  ;;  %p93_p4 = scmp.lt.s32.totalorder %s17_s10, %s17_s10 }
   0xb   :  { %p89_p3 = scmp.ne.s32.totalorder %s17_s10, %s88_s20  ;;  %p94_p5 = scmp.lt.s32.totalorder %s88_s20, %s88_s20 }
   0xd   :  { %p95_p6 = por %p94_p5, %p93_p4 }
   0xf   :  { %p96_p7 = pnand %p95_p6, %p89_p3 }
  0x11   :  { %99 = shalt.err (!%p96_p7)
}
  0x12   :  { %19 = dma.hbm_to_vmem [thread:$0]  %s215_s0, 64, %s17_s10, [#allocation3]  }
  0x13   :  { %s100_s25 = scalar_lea.hbm %s216_s1, 32  ;;  %s102_s30 = scalar_lea.hbm %s216_s1, 8000 }
  0x14   :  { %p101_p8 = scmp.ne.s32.totalorder %s216_s1, %s100_s25  ;;  %p103_p9 = scmp.lt.u32.totalorder %s102_s30, %s100_s25 }
  0x15   :  { %p104_p10 = scmp.lt.u32.totalorder %s100_s25, %s216_s1 }
  0x17   :  { %p105_p11 = por %p104_p10, %p103_p9 }
  0x19   :  { %p106_p12 = pnand %p105_p11, %p101_p8 }
  0x1b   :  { %109 = shalt.err (!%p106_p12)
}
  0x1c   :  { %s110_s0 = scalar_lea.vmem %s169_s12, 32  ;;  %p115_p0 = scmp.lt.s32.totalorder %s169_s12, %s169_s12 }
  0x1d   :  { %p111_p13 = scmp.ne.s32.totalorder %s169_s12, %s110_s0  ;;  %p116_p1 = scmp.lt.s32.totalorder %s110_s0, %s110_s0 }
  0x1f   :  { %p117_p2 = por %p116_p1, %p115_p0 }
  0x21   :  { %p118_p3 = pnand %p117_p2, %p111_p13 }
  0x23   :  { %121 = shalt.err (!%p118_p3)
}
  0x24   :  { %29 = dma.hbm_to_vmem [thread:$0]  %s216_s1, 32, %s169_s12, [#allocation6]  }
  0x25   :  { %144 = dma.done.wait [#allocation3], 64  }
  0x26   :  { %145 = vsyncadd [#allocation3], 4294967232 }
  0x27   :  { %146 = dma.done.wait [#allocation6], 32  }
  0x28   :  { %147 = vsyncadd [#allocation6], 4294967264  ;;  %v39_v0 = vlaneseq  ;;  %v152_v1 = vmov 1983009808   ;;  %v37_v7 = vld [vmem:[#allocation5] sm:$0x3] }
  0x29   :  { %v49_v2 = vunpack.c.l.s4 %v152_v1  ;;  %v36_v12 = vld [vmem:[#allocation2] sm:$0xf]  ;;  %s153_s7 = smov [#allocation7]  }
  0x2a   :  { %v40_v3 = vshrl.u32 %v39_v0, 7  ;;  %s64_s8 = sshll.u32 %s153_s7, 4  ;;  %s65_s8 = int_to_ptr.vmem [resolvable:$true] %s64_s8 }
  0x2b   :  { %v50_v6 = vunpack.c.0.s8 %v49_v2  ;;  %s122_s1 = scalar_lea.vmem %s65_s8, 64  ;;  %p127_p5 = scmp.lt.s32.totalorder %s65_s8, %s65_s8 }
  0x2c   :  { %v41_v4 = vsub.s32 0, %v40_v3  ;;  %v45_v5 = vsub.s32 1, %v40_v3  ;;  %p123_p4 = scmp.ne.s32.totalorder %s65_s8, %s122_s1  ;;  %p128_p6 = scmp.lt.s32.totalorder %s122_s1, %s122_s1 }
  0x2d   :  { %v53_v10 = vsub.s32 %v50_v6, %v40_v3 }
  0x2e   :  { %v42_v8 = vrot.slane %v37_v7, %v41_v4  ;;  %v46_v9 = vrot.slane %v37_v7, %v45_v5  ;;  %p129_p7 = por %p128_p6, %p127_p5 }
  0x30   :  { %v47_v11 = vcombine.low %v42_v8, %v46_v9  ;;  %p130_p8 = pnand %p129_p7, %p123_p4 }
  0x32   :  { %v54_v13 = vrot.slane %v47_v11, %v53_v10 }
  0x34   :  { %v56_v14 = vadd.f32 %v54_v13, %v36_v12 }
  0x36   :  { %57 = vst [vmem:[#allocation7] sm:$0xf] %v56_v14 }
  0x37   :  { %133 = shalt.err (!%p130_p8)
}
  0x38   :  { %s134_s11 = scalar_lea.hbm %s217_s2, 64 }
  0x39   :  { %p135_p9 = scmp.ne.s32.totalorder %s217_s2, %s134_s11  ;;  %p138_p10 = scmp.lt.u32.totalorder %s134_s11, %s217_s2 }
  0x3b   :  { %p140_p11 = pnand %p138_p10, %p135_p9 }
  0x3d   :  { %143 = shalt.err (!%p140_p11)
}
  0x3e   :  { %67 = dma.vmem_to_hbm [thread:$0]  %s65_s8, 64, %s217_s2, [#allocation4]  }
  0x3f   :  { %148 = dma.done.wait [#allocation4], 64  }
  0x40   :  { %149 = vsyncadd [#allocation4], 4294967232 }
  0x41   :  { %71 = vsyncpa [#allocation3], 1 }
  0x42   :  { %72 = vsyncpa [#allocation6], 1 }
  0x43   :  { %73 = vsyncpa [#allocation4], 1 }

</bundles_post_ra>
